<compile_context>
chip_gen: v7x
topology: tpu7x:2x2x1
jax: 0.10.0
libtpu: 0.0.40
codegen_flags: <defaults>
</compile_context>

<pallas_src>
import jax
import jax.numpy as jnp
from jax.experimental import pallas as pl
from jax.experimental.pallas import tpu as pltpu


def _round_up(n, m):
    return ((n + m - 1) // m) * m


def _mlp_kernel(x_ref, w1_ref, b1_ref, w2_ref, b2_ref, oT_ref):
    # x_ref : [tile_b, in]  f32 (natural layout; garbage rows in the last partial
    #                            tile are discarded by the masked output store)
    # w1_ref: [hid, in]     bf16 (VMEM-resident across grid steps)
    # b1_ref: [hid, 1]      f32
    # w2_ref: [nc, hid]     bf16
    # b2_ref: [nc, 1]       f32
    # oT_ref: [nc, tile_b]  f32 (lane-dense stores: batch lives on the lane axis)
    xb = x_ref[...].astype(jnp.bfloat16)                       # VPU cast, free slot

    # fc1 (transposed): hT[h, b] = sum_i w1[h, i] * x[b, i]
    # Contracting dims ((1,), (1,)) lets the MXU do the batch->lane transpose.
    hT = jax.lax.dot_general(
        w1_ref[...], xb,
        dimension_numbers=(((1,), (1,)), ((), ())),
        preferred_element_type=jnp.float32)                    # [hid, tile_b] f32

    # Bias + tanh, lane-dense.  bf16 tanh halves EUP pressure on v6e/v7x; on v5e
    # (no bf16 EUP) Mosaic upcasts internally.
    h = jnp.tanh((hT + b1_ref[...]).astype(jnp.bfloat16))      # [hid, tile_b] bf16

    # fc2 (transposed): out[c, b] = sum_h w2[c, h] * h[h, b]
    # NOTE: if bundle dumps show the skinny MXU stream binding, fc2 (only nc
    # outputs) could be moved to VPU broadcast-MACs; kept on the MXU for clarity.
    outT = jnp.dot(w2_ref[...], h, preferred_element_type=jnp.float32)
    oT_ref[...] = outT + b2_ref[...]                           # [nc, tile_b] f32


def simple_regression_net_forward(x, w1, b1, w2, b2, *,
                                  max_tile_b=8192, target_steps=2):
    """Forward pass matching PyTorch SimpleRegressionNet: tanh(x @ w1.T + b1) @ w2.T + b2.

    x : [B, input_size] float32 (used in its natural layout; never padded/copied in HBM)
    Weights in PyTorch nn.Linear layout:
      w1: [hidden, input_size], b1: [hidden], w2: [num_classes, hidden], b2: [num_classes]
    Returns [B, num_classes] float32.
    """
    if x.dtype != jnp.float32:
        x = x.astype(jnp.float32)
    B, in_size = x.shape
    hidden = w1.shape[0]
    num_classes = w2.shape[0]

    # ---- batch tile selection ------------------------------------------------
    #  * always a multiple of 128 (lane-dense output stores, (8,128) constraint)
    #  * >= `target_steps` grid steps when B allows (v7x megacore sharding)
    #  * round_up(cdiv(B, steps), 128) keeps last-tile padding waste bounded
    #  * capped at max_tile_b: the f32 x block is lane-padded 16->128 in VMEM, so
    #    8192 keeps the double-buffered working set ~14 MiB on every chip gen.
    max_tile_b = max(128, (int(max_tile_b) // 128) * 128)
    tile_b = min(max_tile_b, _round_up(pl.cdiv(B, max(1, int(target_steps))), 128))
    n_tiles = pl.cdiv(B, tile_b)
    tile_b = min(tile_b, _round_up(pl.cdiv(B, n_tiles), 128))   # rebalance last tile
    n_tiles = pl.cdiv(B, tile_b)

    # Tiny weights/biases: cast/reshape once in the wrapper (negligible bytes);
    # constant index_maps keep them VMEM-resident across all grid steps.
    w1b = w1.astype(jnp.bfloat16)                         # [hid, in]
    w2b = w2.astype(jnp.bfloat16)                         # [nc, hid]
    b1c = b1.reshape(hidden, 1).astype(jnp.float32)       # [hid, 1]
    b2c = b2.reshape(num_classes, 1).astype(jnp.float32)  # [nc, 1]

    flops = 2 * B * (in_size * hidden + hidden * num_classes)
    bytes_accessed = (x.size * 4 + w1b.size * 2 + w2b.size * 2
                      + b1c.size * 4 + b2c.size * 4 + num_classes * B * 4)

    outT = pl.pallas_call(
        _mlp_kernel,
        out_shape=jax.ShapeDtypeStruct((num_classes, B), jnp.float32),
        grid_spec=pltpu.PrefetchScalarGridSpec(
            num_scalar_prefetch=0,
            grid=(n_tiles,),
            in_specs=[
                pl.BlockSpec((tile_b, in_size), lambda i: (i, 0)),      # x tile (natural)
                pl.BlockSpec((hidden, in_size), lambda i: (0, 0)),      # w1 resident
                pl.BlockSpec((hidden, 1), lambda i: (0, 0)),            # b1 resident
                pl.BlockSpec((num_classes, hidden), lambda i: (0, 0)),  # w2 resident
                pl.BlockSpec((num_classes, 1), lambda i: (0, 0)),       # b2 resident
            ],
            out_specs=pl.BlockSpec((num_classes, tile_b), lambda i: (0, i)),
        ),
        compiler_params=pltpu.CompilerParams(
            dimension_semantics=("parallel",),
            vmem_limit_bytes=40 * 1024 * 1024),
        cost_estimate=pl.CostEstimate(
            flops=flops,
            transcendentals=B * hidden,
            bytes_accessed=bytes_accessed),
    )(x, w1b, b1c, w2b, b2c)

    # The one remaining layout pass: [num_classes, B] -> [B, num_classes]
    # (~32 B/row; drop it if the consumer can accept class-major activations).
    return outT.T


def init_params(key, input_size, hidden_size, num_classes):
    """Deterministic init mimicking nn.Linear's U(-1/sqrt(fan_in), 1/sqrt(fan_in)).

    PyTorch layout: w1 [hidden, in], b1 [hidden], w2 [out, hidden], b2 [out].
    """
    k1, k2, k3, k4 = jax.random.split(key, 4)
    bound1 = 1.0 / jnp.sqrt(jnp.float32(input_size))
    bound2 = 1.0 / jnp.sqrt(jnp.float32(hidden_size))
    w1 = jax.random.uniform(k1, (hidden_size, input_size), jnp.float32, -bound1, bound1)
    b1 = jax.random.uniform(k2, (hidden_size,), jnp.float32, -bound1, bound1)
    w2 = jax.random.uniform(k3, (num_classes, hidden_size), jnp.float32, -bound2, bound2)
    b2 = jax.random.uniform(k4, (num_classes,), jnp.float32, -bound2, bound2)
    return w1, b1, w2, b2


def _reference_f32(x, w1, b1, w2, b2):
    return jnp.tanh(x @ w1.T + b1) @ w2.T + b2


def _reference_bf16_matched(x, w1, b1, w2, b2):
    # Same transposed bf16-input / f32-accumulate / bf16-tanh recipe as the kernel.
    h = jax.lax.dot_general(
        w1.astype(jnp.bfloat16), x.astype(jnp.bfloat16),
        dimension_numbers=(((1,), (1,)), ((), ())),
        preferred_element_type=jnp.float32)                    # [hid, B]
    h = jnp.tanh((h + b1[:, None]).astype(jnp.bfloat16))
    out = jnp.dot(w2.astype(jnp.bfloat16), h, preferred_element_type=jnp.float32)
    return (out + b2[:, None]).T


if __name__ == "__main__":
    input_size, hidden_size, num_classes, batch = 16, 32, 4, 8

    key = jax.random.PRNGKey(0)
    kx, kp, kx2 = jax.random.split(key, 3)
    x = jax.random.normal(kx, (batch, input_size), jnp.float32)
    w1, b1, w2, b2 = init_params(kp, input_size, hidden_size, num_classes)

    # Small-batch run (single grid step; exercises edge-block masking, B < tile).
    out = jax.block_until_ready(simple_regression_net_forward(x, w1, b1, w2, b2))
    assert out.shape == (batch, num_classes)
    assert jnp.allclose(out, _reference_bf16_matched(x, w1, b1, w2, b2),
                        atol=2e-2, rtol=2e-2)
    assert jnp.allclose(out, _reference_f32(x, w1, b1, w2, b2),
                        atol=6e-2, rtol=6e-2)

    # Multi-step grid: 300 rows -> 2 "parallel" tiles of 256, last tile partial
    # (masked edge block instead of jnp.pad).
    x2 = jax.random.normal(kx2, (300, input_size), jnp.float32)
    out2 = jax.block_until_ready(simple_regression_net_forward(x2, w1, b1, w2, b2))
    assert out2.shape == (300, num_classes)
    assert jnp.allclose(out2, _reference_bf16_matched(x2, w1, b1, w2, b2),
                        atol=2e-2, rtol=2e-2)
    assert jnp.allclose(out2, _reference_f32(x2, w1, b1, w2, b2),
                        atol=6e-2, rtol=6e-2)

    print("KERNEL_OK")
</pallas_src>

<mosaic_0001>
module attributes {stable_mosaic.version = 11 : i64} {
  func.func @_mlp_kernel(%arg0: i32, %arg1: memref<128x16xf32, #tpu.memory_space<vmem>>, %arg2: memref<32x16xbf16, #tpu.memory_space<vmem>>, %arg3: memref<32x1xf32, #tpu.memory_space<vmem>>, %arg4: memref<4x32xbf16, #tpu.memory_space<vmem>>, %arg5: memref<4x1xf32, #tpu.memory_space<vmem>>, %arg6: memref<4x128xf32, #tpu.memory_space<vmem>>) attributes {dimension_semantics = [#tpu.dimension_semantics<parallel>], iteration_bounds = array<i64: 1>, scalar_prefetch = 0 : i64, scratch_operands = 0 : i64, tpu.core_type = #tpu.core_type<tc>, window_params = [{transform_indices = @transform_0, window_bounds = array<i64: 128, 16>}, {pipeline_mode = #tpu.pipeline_mode<synchronous>, transform_indices = @transform_1, window_bounds = array<i64: 32, 16>}, {pipeline_mode = #tpu.pipeline_mode<synchronous>, transform_indices = @transform_2, window_bounds = array<i64: 32, 1>}, {pipeline_mode = #tpu.pipeline_mode<synchronous>, transform_indices = @transform_3, window_bounds = array<i64: 4, 32>}, {pipeline_mode = #tpu.pipeline_mode<synchronous>, transform_indices = @transform_4, window_bounds = array<i64: 4, 1>}, {transform_indices = @transform_5, window_bounds = array<i64: 4, 128>}]} {
    %c0 = arith.constant 0 : index
    %c0_0 = arith.constant 0 : index
    %0 = vector.load %arg1[%c0, %c0_0] : memref<128x16xf32, #tpu.memory_space<vmem>>, vector<128x16xf32>
    %1 = arith.truncf %0 : vector<128x16xf32> to vector<128x16xbf16>
    %c0_1 = arith.constant 0 : index
    %c0_2 = arith.constant 0 : index
    %2 = vector.load %arg2[%c0_1, %c0_2] : memref<32x16xbf16, #tpu.memory_space<vmem>>, vector<32x16xbf16>
    %cst = arith.constant dense<0.000000e+00> : vector<32x128xf32>
    %3 = tpu.matmul %2, %1, %cst {dimension_numbers = #tpu.dot_dimension_numbers<[1], [1], [0], [0], [0, 0, 1, 0], [], []>} : vector<32x16xbf16>, vector<128x16xbf16>, vector<32x128xf32> -> vector<32x128xf32>
    %c0_3 = arith.constant 0 : index
    %c0_4 = arith.constant 0 : index
    %4 = vector.load %arg3[%c0_3, %c0_4] : memref<32x1xf32, #tpu.memory_space<vmem>>, vector<32x1xf32>
    %5 = vector.broadcast %4 : vector<32x1xf32> to vector<32x128xf32>
    %6 = arith.addf %3, %5 : vector<32x128xf32>
    %7 = arith.truncf %6 : vector<32x128xf32> to vector<32x128xbf16>
    %8 = math.tanh %7 : vector<32x128xbf16>
    %c0_5 = arith.constant 0 : index
    %c0_6 = arith.constant 0 : index
    %9 = vector.load %arg4[%c0_5, %c0_6] : memref<4x32xbf16, #tpu.memory_space<vmem>>, vector<4x32xbf16>
    %cst_7 = arith.constant dense<0.000000e+00> : vector<4x128xf32>
    %10 = tpu.matmul %9, %8, %cst_7 {dimension_numbers = #tpu.dot_dimension_numbers<[1], [0], [0], [1], [0, 0, 1, 1], [], []>} : vector<4x32xbf16>, vector<32x128xbf16>, vector<4x128xf32> -> vector<4x128xf32>
    %c0_8 = arith.constant 0 : index
    %c0_9 = arith.constant 0 : index
    %11 = vector.load %arg5[%c0_8, %c0_9] : memref<4x1xf32, #tpu.memory_space<vmem>>, vector<4x1xf32>
    %12 = vector.broadcast %11 : vector<4x1xf32> to vector<4x128xf32>
    %13 = arith.addf %10, %12 : vector<4x128xf32>
    %c0_10 = arith.constant 0 : index
    %c0_11 = arith.constant 0 : index
    %14 = vector.load %arg6[%c0_10, %c0_11] : memref<4x128xf32, #tpu.memory_space<vmem>>, vector<4x128xf32>
    tpu.vector_store %arg6[%c0_10, %c0_11], %13 {strides = array<i32>} : memref<4x128xf32, #tpu.memory_space<vmem>>, vector<4x128xf32>,
    return
  }
  func.func @transform_0(%arg0: i32) -> (i32, i32) {
    %c0_i32 = arith.constant 0 : i32
    %c0_i32_0 = arith.constant 0 : i32
    return %arg0, %c0_i32 : i32, i32
  }
  func.func @transform_1(%arg0: i32) -> (i32, i32) {
    %c0_i32 = arith.constant 0 : i32
    %c0_i32_0 = arith.constant 0 : i32
    %c0_i32_1 = arith.constant 0 : i32
    return %c0_i32, %c0_i32_0 : i32, i32
  }
  func.func @transform_2(%arg0: i32) -> (i32, i32) {
    %c0_i32 = arith.constant 0 : i32
    %c0_i32_0 = arith.constant 0 : i32
    %c0_i32_1 = arith.constant 0 : i32
    return %c0_i32, %c0_i32_0 : i32, i32
  }
  func.func @transform_3(%arg0: i32) -> (i32, i32) {
    %c0_i32 = arith.constant 0 : i32
    %c0_i32_0 = arith.constant 0 : i32
    %c0_i32_1 = arith.constant 0 : i32
    return %c0_i32, %c0_i32_0 : i32, i32
  }
  func.func @transform_4(%arg0: i32) -> (i32, i32) {
    %c0_i32 = arith.constant 0 : i32
    %c0_i32_0 = arith.constant 0 : i32
    %c0_i32_1 = arith.constant 0 : i32
    return %c0_i32, %c0_i32_0 : i32, i32
  }
  func.func @transform_5(%arg0: i32) -> (i32, i32) {
    %c0_i32 = arith.constant 0 : i32
    %c0_i32_0 = arith.constant 0 : i32
    return %c0_i32, %arg0 : i32, i32
  }
}

</mosaic_0001>

<bundles_post_ra>
// kernel: tpu_custom_call.1
= control target key start
LH: loop header
LB: loop body
LE: loop exit
PB: predicated region body
PF: predicated region fallthrough
CT: control target
= control target key end

     0   :  { %vm84_vm0 = vcmask 130048   ;;  %v324_v5 = vmov 0   ;;  %s460_s0 = inlined_call_operand.vmem [shape: f32[8,16], index: 0, kind: input, shape index: {}]   ;;  %s461_s1 = inlined_call_operand.vmem [shape: bf16[32,16], index: 1, kind: input, shape index: {}]   ;;  %s462_s2 = inlined_call_operand.vmem [shape: f32[32,1], index: 2, kind: input, shape index: {}]   ;;  %s463_s3 = inlined_call_operand.vmem [shape: bf16[4,32], index: 3, kind: input, shape index: {}]   ;;  %s464_s4 = inlined_call_operand.vmem [shape: f32[4,1], index: 4, kind: input, shape index: {}]   ;;  %s465_s5 = inlined_call_operand.hbm [shape: f32[4,8], index: 5, kind: output, shape index: {}]  }
   0x1   :  { %v22_v0 = vld [vmem:[%s460_s0] sm:$0xff]  ;;  %v23_v1 = vld [vmem:[%s460_s0 + $0x8] sm:$0xff]  ;;  %v24_v2 = vld [vmem:[%s460_s0 + $0x10] sm:$0xff]  ;;  %292 = vset.pattern.permute.xlu0 %v324_v5  ;;  %293 = vset.pattern.permute.xlu1 %v324_v5 }
   0x2   :  { %v38_v3 = vpack.c.bf16 %v23_v1, %v22_v0  ;;  %v25_v4 = vld [vmem:[%s460_s0 + $0x18] sm:$0xff]  ;;  %v26_v8 = vld [vmem:[%s460_s0 + $0x20] sm:$0xff]  ;;  %v27_v9 = vld [vmem:[%s460_s0 + $0x28] sm:$0xff] }
   0x3   :  { %v39_v6 = vpack.c.bf16 %v25_v4, %v24_v2  ;;  %v294_v10 = vld [vmem:[%s461_s1] sm:$0xff]   ;;  %v52_v12 = vld [vmem:[%s462_s2 + $0x10] sm:$0xff]  ;;  %v40_v14 = vpack.c.bf16 %v27_v9, %v26_v8  ;;  %v51_v15 = vld [vmem:[%s462_s2 + $0x8] sm:$0xff] }
   0x4   :  { %280 = vmatprep.subr.msk.bf16.mxu0 %vm84_vm0, %v38_v3  ;;  %v92_v7 = vsel %vm84_vm0, %v38_v3, 0  ;;  %v50_v11 = vld [vmem:[%s462_s2] sm:$0xff]  ;;  %268 = vmatprep.mubr.msk.bf16.mxu0 %vm84_vm0, %v294_v10 }
   0x5   :  { %253 = vmatpush3.bf16.xpose.msra.mxu0 %v92_v7  ;;  %56 = vperm.xlu0 %292, %v50_v11   ;;  %v95_v13 = vsel %vm84_vm0, %v39_v6, 0 }
   0x6   :  { %281 = vmatprep.subr.msk.bf16.mxu0 %vm84_vm0, %v39_v6  ;;  %66 = vperm.xlu1 %293, %v52_v12  }
   0x7   :  { %10 = vsyncpa [#allocation3], 0  ;;  %v53_v16 = vld [vmem:[%s462_s2 + $0x18] sm:$0xff]  ;;  %v169_v17 = vld [vmem:[%s464_s4] sm:$0xf]  ;;  %v98_v20 = vsel %vm84_vm0, %v40_v14, 0 }
   0x8   :  { %v28_v18 = vld [vmem:[%s460_s0 + $0x30] sm:$0xff]  ;;  %v29_v19 = vld [vmem:[%s460_s0 + $0x38] sm:$0xff]  ;;  %v30_v22 = vld [vmem:[%s460_s0 + $0x40] sm:$0xff]  ;;  %v325_v40 = vmov 0.0   ;;  %vm326_vm1 = vmmov 0   ;;  %vm175_vm2 = vcmask 261120  }
   0x9   :  { %61 = vperm.xlu0 %292, %v51_v15   ;;  %v41_v21 = vpack.c.bf16 %v29_v19, %v28_v18  ;;  %v31_v23 = vld [vmem:[%s460_s0 + $0x48] sm:$0xff]  ;;  %v32_v26 = vld [vmem:[%s460_s0 + $0x50] sm:$0xff]  ;;  %v33_v27 = vld [vmem:[%s460_s0 + $0x58] sm:$0xff]  ;;  %272 = vmatprep.subr.bf16.mxu1 %v325_v40  ;;  %s327_s12 = smov [#allocation2]  }
   0xa   :  { %71 = vperm.xlu1 %293, %v53_v16   ;;  %v42_v25 = vpack.c.bf16 %v31_v23, %v30_v22  ;;  %v43_v29 = vpack.c.bf16 %v33_v27, %v32_v26  ;;  %v34_v30 = vld [vmem:[%s460_s0 + $0x60] sm:$0xff]  ;;  %v35_v31 = vld [vmem:[%s460_s0 + $0x68] sm:$0xff]  ;;  %v36_v34 = vld [vmem:[%s460_s0 + $0x70] sm:$0xff]  ;;  %276 = vmatprep.mubr.msk.bf16.mxu1 %vm326_vm1, %v325_v40  ;;  %s226_s13 = sshll.u32 %s327_s12, 4  ;;  %s227_s13 = int_to_ptr.vmem [resolvable:$true] %s226_s13 }
   0xb   :  { %v101_v24 = vsel %vm84_vm0, %v41_v21, 0  ;;  %v44_v33 = vpack.c.bf16 %v35_v31, %v34_v30  ;;  %v37_v35 = vld [vmem:[%s460_s0 + $0x78] sm:$0xff]  ;;  %v295_v39 = vld [vmem:[%s461_s1 + $0x8] sm:$0xff]   ;;  %v168_v57 = vld [vmem:[%s463_s3] sm:$0x3]  ;;  %s300_s14 = scalar_lea.vmem %s227_s13, 64  ;;  %p305_p1 = scmp.lt.s32.totalorder %s227_s13, %s227_s13 }
   0xc   :  { %v104_v28 = vsel %vm84_vm0, %v42_v25, 0  ;;  %v107_v32 = vsel %vm84_vm0, %v43_v29, 0  ;;  %v45_v37 = vpack.c.bf16 %v37_v35, %v36_v34  ;;  %p301_p0 = scmp.ne.s32.totalorder %s227_s13, %s300_s14  ;;  %p306_p2 = scmp.lt.s32.totalorder %s300_s14, %s300_s14 }
   0xd   :  { %255 = vmatpush3.bf16.xpose.msra.mxu0 %v95_v13  ;;  %172 = vperm.xlu0 %292, %v169_v17   ;;  %v110_v36 = vsel %vm84_vm0, %v44_v33, 0 }
   0xe   :  { %282 = vmatprep.subr.msk.bf16.mxu0 %vm84_vm0, %v40_v14  ;;  %v113_v38 = vsel %vm84_vm0, %v45_v37, 0  ;;  %p307_p3 = por %p306_p2, %p305_p1 }
  0x10   :  { %p308_p4 = pnand %p307_p3, %p301_p0 }
  0x15   :  { %257 = vmatpush3.bf16.xpose.msra.mxu0 %v98_v20 }
  0x16   :  { %283 = vmatprep.subr.msk.bf16.mxu0 %vm84_vm0, %v41_v21 }
  0x1d   :  { %259 = vmatpush3.bf16.xpose.msra.mxu0 %v101_v24 }
  0x1e   :  { %284 = vmatprep.subr.msk.bf16.mxu0 %vm84_vm0, %v42_v25 }
  0x25   :  { %261 = vmatpush3.bf16.xpose.msra.mxu0 %v104_v28 }
  0x26   :  { %285 = vmatprep.subr.msk.bf16.mxu0 %vm84_vm0, %v43_v29 }
  0x2d   :  { %263 = vmatpush3.bf16.xpose.msra.mxu0 %v107_v32 }
  0x2e   :  { %286 = vmatprep.subr.msk.bf16.mxu0 %vm84_vm0, %v44_v33 }
  0x35   :  { %265 = vmatpush3.bf16.xpose.msra.mxu0 %v110_v36 }
  0x36   :  { %287 = vmatprep.subr.msk.bf16.mxu0 %vm84_vm0, %v45_v37 }
  0x3d   :  { %267 = vmatpush3.bf16.xpose.msra.mxu0 %v113_v38 }
  0x44   :  { %269 = vmatmul.mubr.msk.bf16.vlgmr.msra.gmra.mrb[0].mxu0 %vm84_vm0, %v295_v39 }
  0x84   :  { %v57_v42 = vpop.permute.xlu0 %56 }
  0x85   :  { %v67_v41 = vpop.permute.xlu1 %66 }
  0x88   :  { %v62_v47 = vpop.permute.xlu0 %61 }
  0x89   :  { %v72_v44 = vpop.permute.xlu1 %71 }
  0x8c   :  { %v173_v58 = vpop.permute.xlu0 %172 }
 0x117   :  { %v270_v43 = vpop.f32.mrb[0].mxu0 }
 0x118   :  { %v149_v45 = vpop.f32.mrb[1].mxu0  ;;  %v158_v48 = vadd.f32 %v270_v43, %v67_v41 }
 0x119   :  { %v271_v46 = vpop.f32.mrb[2].mxu0  ;;  %v150_v51 = vadd.f32 %v149_v45, %v57_v42 }
 0x11a   :  { %v161_v49 = vadd.f32 %v271_v46, %v72_v44  ;;  %v152_v50 = vpop.f32.mrb[3].mxu0 }
 0x11b   :  { %v153_v52 = vadd.f32 %v152_v50, %v62_v47 }
 0x11c   :  { %v165_v53 = vpack.c.bf16 %v161_v49, %v158_v48 }
 0x11d   :  { %v164_v54 = vpack.c.bf16 %v153_v52, %v150_v51 }
 0x11f   :  { %296 = vtanh.bf16 %v164_v54 }
 0x120   :  { %298 = vtanh.bf16 %v165_v53 }
 0x12a   :  { %v297_v55 = vpop.eup %296 }
 0x12b   :  { %273 = vmatpush3.bf16.msra.mxu1 %v297_v55  ;;  %v299_v56 = vpop.eup %298 }
 0x12c   :  { %274 = vmatprep.subr.bf16.mxu1 %v325_v40 }
 0x12f   :  { %275 = vmatpush3.bf16.msra.mxu1 %v299_v56 }
 0x132   :  { %277 = vmatmul.mubr.msk.bf16.vlgmr.msra.gmra.mrb[0].mxu1 %vm175_vm2, %v168_v57 }
 0x205   :  { %v213_v59 = vpop.f32.mrb[0].mxu1 }
 0x206   :  { %v214_v60 = vadd.f32 %v213_v59, %v173_v58  ;;  %v278_v61 = vpop.f32.mrb[1].mxu1 }
 0x207   :  { %v216_v62 = vpop.f32.mrb[2].mxu1 }
 0x208   :  { %219 = vst [vmem:[#allocation2] sm:$0xf] %v214_v60  ;;  %v279_v63 = vpop.f32.mrb[3].mxu1 }
 0x209   :  { %311 = shalt.err (!%p308_p4)
}
 0x20a   :  { %s312_s16 = scalar_lea.hbm %s465_s5, 64 }
 0x20b   :  { %p313_p5 = scmp.ne.s32.totalorder %s465_s5, %s312_s16  ;;  %p316_p6 = scmp.lt.u32.totalorder %s312_s16, %s465_s5 }
 0x20d   :  { %p318_p7 = pnand %p316_p6, %p313_p5 }
 0x20f   :  { %321 = shalt.err (!%p318_p7)
}
 0x210   :  { %229 = dma.vmem_to_hbm [thread:$0]  %s227_s13, 64, %s465_s5, [#allocation3]  }
 0x211   :  { %322 = dma.done.wait [#allocation3], 64  }
 0x212   :  { %323 = vsyncadd [#allocation3], 4294967232 }
 0x213   :  { %233 = vsyncpa [#allocation3], 1 }

</bundles_post_ra>
